<compile_context>
chip_gen: v5e
topology: v5e:2x2
jax: 0.10.0
libtpu: 0.0.40
codegen_flags: <defaults>
</compile_context>

<pallas_src>
import functools

import jax
import jax.numpy as jnp
from jax import lax
from jax.experimental import pallas as pl
from jax.experimental.pallas import tpu as pltpu


def _round_up(n, m):
    return (n + m - 1) // m * m


# --------------------------------------------------------------------------
# Hardware queries / feature probes
# --------------------------------------------------------------------------
def _vmem_capacity_bytes():
    """Physical VMEM per TensorCore; conservative fallback if the query fails."""
    try:
        return int(pltpu.get_tpu_info().vmem_capacity_bytes)
    except Exception:
        return 64 * 1024 * 1024          # v7x per-TC VMEM (smallest generation)


@functools.lru_cache(maxsize=1)
def _buffered_specs_supported():
    """Probe pipeline_mode=pl.Buffered(1) (single-buffered resident inputs) on a
    top-level pallas_call.  Falls back to default double-buffering if this
    JAX/Mosaic version rejects it or produces wrong results."""
    if not hasattr(pl, "Buffered"):
        return False

    def k(a_ref, o_ref):
        o_ref[...] = a_ref[...] * jnp.float32(2.0)

    try:
        fn = pl.pallas_call(
            k,
            out_shape=jax.ShapeDtypeStruct((8, 128), jnp.float32),
            grid=(2,),
            in_specs=[pl.BlockSpec((8, 128), lambda i: (0, 0),
                                   pipeline_mode=pl.Buffered(1))],
            out_specs=pl.BlockSpec((8, 128), lambda i: (0, 0)),
        )
        out = fn(jnp.ones((8, 128), jnp.float32))
        jax.block_until_ready(out)
        return bool(jnp.allclose(out, 2.0))
    except Exception:
        return False


# --------------------------------------------------------------------------
# Fused kernel: (Linear+bias -> GELU -> LayerNorm -> Linear) x 2
# --------------------------------------------------------------------------
def fused_ae_kernel(x_ref,
                    ew1_ref, eb1_ref, eg_ref, ebe_ref, ew2_ref,
                    dw1_ref, db1_ref, dg_ref, dbe_ref, dw2_ref,
                    z_ref, y_ref,
                    *, latent_size, pad_cols, mxu_dtype, approx_gelu):
    inv_n = jnp.float32(1.0 / latent_size)
    eps = jnp.float32(1e-5)
    npad = jnp.float32(pad_cols)

    def gelu(h):
        if approx_gelu:
            # tanh approximation runs on the EUP slot (v6e/v7x) instead of the
            # erf polynomial on the VALU.  Only when accuracy contract allows.
            c = jnp.float32(0.7978845608028654)        # sqrt(2/pi)
            return jnp.float32(0.5) * h * (jnp.float32(1.0) + jnp.tanh(
                c * (h + jnp.float32(0.044715) * h * h * h)))
        # exact (erf-based) GELU, matching F.gelu(approximate='none').
        return jnp.float32(0.5) * h * (jnp.float32(1.0) +
                                       lax.erf(h * jnp.float32(0.7071067811865476)))

    def block(xin, w1_ref, b1_ref, g_ref, be_ref, w2_ref):
        # fc1 (+bias): MXU matmul, f32 accumulation; GELU/LN math stays f32.
        h = jnp.dot(xin, w1_ref[...], preferred_element_type=jnp.float32)
        h = gelu(h + b1_ref[...])                         # padded b1 columns = 0
        # Padded columns of h are exactly 0 (zero-padded W1/b1), so the sums
        # over the padded width only need dividing by the true latent_size.
        mu = jnp.sum(h, axis=-1, keepdims=True) * inv_n
        d = h - mu
        # Centered two-pass variance (exact torch.nn.LayerNorm parity); padded
        # columns contribute exactly pad_cols * mu^2 — subtract it.
        ssq = jnp.sum(d * d, axis=-1, keepdims=True) - npad * (mu * mu)
        hn = d * lax.rsqrt(ssq * inv_n + eps)
        hn = hn * g_ref[...] + be_ref[...]                # padded gamma/beta = 0
        # TODO(synk): optionally fold gamma into W2 at pack time (VALU micro-opt).
        return jnp.dot(hn.astype(mxu_dtype), w2_ref[...],
                       preferred_element_type=jnp.float32)

    x = x_ref[...].astype(mxu_dtype)       # cast in-kernel: no extra XLA pass over x
    z = block(x, ew1_ref, eb1_ref, eg_ref, ebe_ref, ew2_ref)
    z_ref[...] = z.astype(z_ref.dtype)
    # Decoder consumes the f32 latent (not the rounded output) — matches torch.
    y = block(z.astype(mxu_dtype), dw1_ref, db1_ref, dg_ref, dbe_ref, dw2_ref)
    y_ref[...] = y.astype(y_ref.dtype)


# --------------------------------------------------------------------------
# Tiling / VMEM heuristics
# --------------------------------------------------------------------------
def _vmem_estimate_bytes(tb, f_pad, l_pad, w_isz, x_isz, o_isz, weight_buffers):
    """Conservative static VMEM estimate for one pallas_call."""
    weights = (2 * f_pad * l_pad + 2 * l_pad * l_pad) * w_isz * weight_buffers
    vectors = 6 * l_pad * 4 * weight_buffers
    io = 2 * tb * (f_pad * x_isz + l_pad * o_isz + f_pad * o_isz)   # streamed, dbl-buf
    interm = 6 * tb * max(f_pad, l_pad) * 4                         # f32 temporaries
    return weights + vectors + io + interm


def _pick_batch_tile(B, batch_tile):
    """Pick (tb, b_pad).  Guarantees >=2 grid steps when B >= 64 (v7x megacore
    sharding of the parallel batch axis); prefers tiles that divide B exactly
    so no batch padding / output slicing is emitted."""
    batch_tile = max(32, _round_up(batch_tile, 32))
    if B < 64:
        return B, B                       # single full-batch tile (block == array dim)
    half = _round_up(-(-B // 2), 32)
    cap = min(batch_tile, _round_up(B, 32), half)
    tb = cap
    for cand in range(cap, max(31, cap // 2 - 1), -32):
        if B % cand == 0:
            tb = cand
            break
    return tb, _round_up(B, tb)


# --------------------------------------------------------------------------
# Wrapper: batch-tiled, resident-weight pallas_call
# --------------------------------------------------------------------------
@functools.partial(
    jax.jit,
    static_argnames=("feature_size", "latent_size", "batch_tile",
                     "out_dtype", "approx_gelu", "use_buffered"))
def _autoencoder_forward(packed, x, *, feature_size, latent_size, batch_tile,
                         out_dtype, approx_gelu, use_buffered):
    B = x.shape[0]
    f_pad, l_pad = packed["enc_w1"].shape
    mxu_dtype = packed["enc_w1"].dtype
    w_isz = jnp.dtype(mxu_dtype).itemsize
    x_isz = jnp.dtype(x.dtype).itemsize
    o_isz = jnp.dtype(out_dtype).itemsize

    # ---- batch-tile selection ----
    tb, b_pad = _pick_batch_tile(B, batch_tile)

    # ---- per-generation VMEM budget; shrink the tile if we would overflow ----
    budget = min(int(_vmem_capacity_bytes() * 0.85), 96 * 1024 * 1024)
    wbufs = 1 if use_buffered else 2
    est = lambda t: _vmem_estimate_bytes(t, f_pad, l_pad, w_isz, x_isz, o_isz, wbufs)
    while tb > 32 and est(tb) > budget:
        tb = max(32, _round_up(tb // 2, 32))
        b_pad = _round_up(B, tb)
    # TODO(synk): if resident weights alone blow the budget (huge feature_size
    # on v7x), add a K-tiling grid axis over f_pad instead of shrinking tb.

    grid = (b_pad // tb,)
    vmem_limit = int(min(max(est(tb) * 1.5, 32 * 1024 * 1024), budget))

    # ---- pad only when actually needed (no extra XLA passes over x) ----
    if b_pad != B or f_pad != feature_size:
        x_in = jnp.pad(x, ((0, b_pad - B), (0, f_pad - feature_size)))
    else:
        x_in = x

    row = lambda i: (i, 0)          # streamed along batch tiles
    rep = lambda i: (0, 0)          # resident across the whole grid

    def wspec(shape):               # resident weights / vectors: single-buffered
        if use_buffered:
            return pl.BlockSpec(shape, rep, pipeline_mode=pl.Buffered(1))
        return pl.BlockSpec(shape, rep)

    kernel = functools.partial(
        fused_ae_kernel, latent_size=latent_size,
        pad_cols=l_pad - latent_size, mxu_dtype=mxu_dtype,
        approx_gelu=approx_gelu)

    flops = 4 * b_pad * l_pad * (f_pad + l_pad)
    transcendentals = 2 * b_pad * l_pad
    bytes_accessed = ((2 * f_pad * l_pad + 2 * l_pad * l_pad) * w_isz
                      + 6 * l_pad * 4
                      + b_pad * f_pad * x_isz
                      + b_pad * (l_pad + f_pad) * o_isz)

    z_p, y_p = pl.pallas_call(
        kernel,
        out_shape=(jax.ShapeDtypeStruct((b_pad, l_pad), out_dtype),
                   jax.ShapeDtypeStruct((b_pad, f_pad), out_dtype)),
        grid=grid,
        in_specs=[
            pl.BlockSpec((tb, f_pad), row),        # x tile (cast in-kernel)
            wspec((f_pad, l_pad)),                 # enc W1 [in, latent]
            wspec((1, l_pad)),                     # enc b1
            wspec((1, l_pad)),                     # enc gamma
            wspec((1, l_pad)),                     # enc beta
            wspec((l_pad, l_pad)),                 # enc W2 [latent, latent]
            wspec((l_pad, l_pad)),                 # dec W1 [latent, latent]
            wspec((1, l_pad)),                     # dec b1
            wspec((1, l_pad)),                     # dec gamma
            wspec((1, l_pad)),                     # dec beta
            wspec((l_pad, f_pad)),                 # dec W2 [latent, feature]
        ],
        out_specs=(pl.BlockSpec((tb, l_pad), row),
                   pl.BlockSpec((tb, f_pad), row)),
        compiler_params=pltpu.CompilerParams(
            dimension_semantics=("parallel",),
            vmem_limit_bytes=vmem_limit),
        cost_estimate=pl.CostEstimate(
            flops=flops, transcendentals=transcendentals,
            bytes_accessed=bytes_accessed),
    )(x_in,
      packed["enc_w1"], packed["enc_b1"], packed["enc_g"], packed["enc_be"],
      packed["enc_w2"],
      packed["dec_w1"], packed["dec_b1"], packed["dec_g"], packed["dec_be"],
      packed["dec_w2"])

    z = z_p if (b_pad == B and l_pad == latent_size) else z_p[:B, :latent_size]
    y = y_p if (b_pad == B and f_pad == feature_size) else y_p[:B, :feature_size]
    return z, y


def autoencoder_forward(packed, x, *, feature_size, latent_size,
                        batch_tile=256, out_dtype=None, approx_gelu=False):
    """Fused AutoEncoderLayer forward.  Returns (z, y) = (encoder(x), decoder(z))."""
    if out_dtype is None:
        out_dtype = packed["enc_w1"].dtype
    return _autoencoder_forward(
        packed, x,
        feature_size=int(feature_size), latent_size=int(latent_size),
        batch_tile=int(batch_tile), out_dtype=jnp.dtype(out_dtype),
        approx_gelu=bool(approx_gelu),
        use_buffered=_buffered_specs_supported())


# --------------------------------------------------------------------------
# Parameter construction (PyTorch layout) and one-time packing
# --------------------------------------------------------------------------
def init_linear(key, out_dim, in_dim, bias=True):
    """Deterministic PyTorch-nn.Linear-style init (uniform +/- 1/sqrt(in))."""
    kw, kb = jax.random.split(key)
    bound = 1.0 / jnp.sqrt(jnp.float32(in_dim))
    w = jax.random.uniform(kw, (out_dim, in_dim), jnp.float32, -bound, bound)
    b = (jax.random.uniform(kb, (out_dim,), jnp.float32, -bound, bound)
         if bias else None)
    return w, b


def make_autoencoder_params(key, feature_size, latent_size):
    k1, k2, k3, k4 = jax.random.split(key, 4)
    p = {}
    p["enc_fc1_w"], p["enc_fc1_b"] = init_linear(k1, latent_size, feature_size, True)
    p["enc_ln_g"] = jnp.ones((latent_size,), jnp.float32)
    p["enc_ln_b"] = jnp.zeros((latent_size,), jnp.float32)
    p["enc_lat_w"], _ = init_linear(k2, latent_size, latent_size, False)
    p["dec_fc1_w"], p["dec_fc1_b"] = init_linear(k3, latent_size, latent_size, True)
    p["dec_ln_g"] = jnp.ones((latent_size,), jnp.float32)
    p["dec_ln_b"] = jnp.zeros((latent_size,), jnp.float32)
    p["dec_rec_w"], _ = init_linear(k4, feature_size, latent_size, False)
    return p


def pack_params(raw, feature_size, latent_size, mxu_dtype=jnp.bfloat16):
    """One-time prep: transpose to [in,out], zero-pad to 128-lane multiples, cast."""
    # TODO(synk): evaluate fp8 (e4m3) packing for enc_w1/dec_w2 on v7x only.
    f_pad = _round_up(feature_size, 128)
    l_pad = _round_up(latent_size, 128)

    def w_t(w, d_in, d_out, p_in, p_out):
        wt = jnp.asarray(w, jnp.float32).T                         # [in, out]
        wt = jnp.pad(wt, ((0, p_in - d_in), (0, p_out - d_out)))
        return wt.astype(mxu_dtype)

    def vec(v):
        v = jnp.asarray(v, jnp.float32).reshape(1, latent_size)
        return jnp.pad(v, ((0, 0), (0, l_pad - latent_size)))      # stays f32

    return {
        "enc_w1": w_t(raw["enc_fc1_w"], feature_size, latent_size, f_pad, l_pad),
        "enc_b1": vec(raw["enc_fc1_b"]),
        "enc_g":  vec(raw["enc_ln_g"]),
        "enc_be": vec(raw["enc_ln_b"]),
        "enc_w2": w_t(raw["enc_lat_w"], latent_size, latent_size, l_pad, l_pad),
        "dec_w1": w_t(raw["dec_fc1_w"], latent_size, latent_size, l_pad, l_pad),
        "dec_b1": vec(raw["dec_fc1_b"]),
        "dec_g":  vec(raw["dec_ln_g"]),
        "dec_be": vec(raw["dec_ln_b"]),
        "dec_w2": w_t(raw["dec_rec_w"], latent_size, feature_size, l_pad, f_pad),
    }


# --------------------------------------------------------------------------
# Pure-JAX reference (same matmul dtype strategy for apples-to-apples checks)
# --------------------------------------------------------------------------
def reference_forward(raw, x, mxu_dtype=jnp.float32):
    def block(x, w1, b1, g, beta, w2):
        h = jnp.dot(x.astype(mxu_dtype), w1.T.astype(mxu_dtype),
                    preferred_element_type=jnp.float32) + b1
        h = 0.5 * h * (1.0 + lax.erf(h * 0.7071067811865476))
        mu = jnp.mean(h, -1, keepdims=True)
        var = jnp.mean((h - mu) ** 2, -1, keepdims=True)
        hn = (h - mu) * lax.rsqrt(var + 1e-5) * g + beta
        return jnp.dot(hn.astype(mxu_dtype), w2.T.astype(mxu_dtype),
                       preferred_element_type=jnp.float32)
    z = block(x, raw["enc_fc1_w"], raw["enc_fc1_b"],
              raw["enc_ln_g"], raw["enc_ln_b"], raw["enc_lat_w"])
    y = block(z, raw["dec_fc1_w"], raw["dec_fc1_b"],
              raw["dec_ln_g"], raw["dec_ln_b"], raw["dec_rec_w"])
    return z, y


if __name__ == "__main__":
    feature_size = 32
    latent_size = 16

    key = jax.random.PRNGKey(0)
    k_params, k_x, k_x2 = jax.random.split(key, 3)
    raw = make_autoencoder_params(k_params, feature_size, latent_size)

    # ---- default path: bf16 MXU feeds, f32 GELU/LN math, bf16 outputs ----
    batch = 8
    x = jax.random.normal(k_x, (batch, feature_size), jnp.float32)
    packed_bf16 = pack_params(raw, feature_size, latent_size, jnp.bfloat16)
    z, y = autoencoder_forward(packed_bf16, x,
                               feature_size=feature_size, latent_size=latent_size)
    jax.block_until_ready((z, y))
    assert z.shape == (batch, latent_size)
    assert y.shape == (batch, feature_size)
    z_ref16, y_ref16 = reference_forward(raw, x, jnp.bfloat16)
    assert jnp.allclose(z.astype(jnp.float32), z_ref16, atol=2e-2, rtol=2e-2)
    assert jnp.allclose(y.astype(jnp.float32), y_ref16, atol=2e-2, rtol=2e-2)

    # ---- multi-tile path (grid > 1, batch padding + output slicing) ----
    batch2 = 160
    x2 = jax.random.normal(k_x2, (batch2, feature_size), jnp.float32)
    z2, y2 = autoencoder_forward(packed_bf16, x2,
                                 feature_size=feature_size, latent_size=latent_size)
    jax.block_until_ready((z2, y2))
    assert z2.shape == (batch2, latent_size)
    assert y2.shape == (batch2, feature_size)
    z2_ref, y2_ref = reference_forward(raw, x2, jnp.bfloat16)
    assert jnp.allclose(z2.astype(jnp.float32), z2_ref, atol=2e-2, rtol=2e-2)
    assert jnp.allclose(y2.astype(jnp.float32), y2_ref, atol=2e-2, rtol=2e-2)

    # ---- fp32 validation path (strict check against the fp32 reference) ----
    packed_f32 = pack_params(raw, feature_size, latent_size, jnp.float32)
    z32, y32 = autoencoder_forward(packed_f32, x,
                                   feature_size=feature_size, latent_size=latent_size)
    jax.block_until_ready((z32, y32))
    z_ref, y_ref = reference_forward(raw, x, jnp.float32)
    assert jnp.allclose(z32, z_ref, atol=1e-3, rtol=1e-3)
    assert jnp.allclose(y32, y_ref, atol=1e-3, rtol=1e-3)

    print("KERNEL_OK")
</pallas_src>

<mosaic_0001>
module attributes {stable_mosaic.version = 11 : i64} {
  func.func @k(%arg0: i32, %arg1: memref<8x128xf32, #tpu.memory_space<vmem>>, %arg2: memref<8x128xf32, #tpu.memory_space<vmem>>) attributes {dimension_semantics = [#tpu.dimension_semantics<arbitrary>], iteration_bounds = array<i64: 2>, scalar_prefetch = 0 : i64, scratch_operands = 0 : i64, tpu.core_type = #tpu.core_type<tc>, window_params = [{pipeline_mode = #tpu.pipeline_mode<synchronous>, transform_indices = @transform_0, window_bounds = array<i64: 8, 128>}, {pipeline_mode = #tpu.pipeline_mode<synchronous>, transform_indices = @transform_1, window_bounds = array<i64: 8, 128>}]} {
    %c0 = arith.constant 0 : index
    %c0_0 = arith.constant 0 : index
    %0 = vector.load %arg1[%c0, %c0_0] : memref<8x128xf32, #tpu.memory_space<vmem>>, vector<8x128xf32>
    %cst = arith.constant 2.000000e+00 : f32
    %1 = vector.broadcast %cst : f32 to vector<8x128xf32>
    %2 = arith.mulf %0, %1 : vector<8x128xf32>
    %c0_1 = arith.constant 0 : index
    %c0_2 = arith.constant 0 : index
    %3 = vector.load %arg2[%c0_1, %c0_2] : memref<8x128xf32, #tpu.memory_space<vmem>>, vector<8x128xf32>
    tpu.vector_store %arg2[%c0_1, %c0_2], %2 {strides = array<i32>} : memref<8x128xf32, #tpu.memory_space<vmem>>, vector<8x128xf32>,
    return
  }
  func.func @transform_0(%arg0: i32) -> (i32, i32) {
    %c0_i32 = arith.constant 0 : i32
    %c0_i32_0 = arith.constant 0 : i32
    %c0_i32_1 = arith.constant 0 : i32
    return %c0_i32, %c0_i32_0 : i32, i32
  }
  func.func @transform_1(%arg0: i32) -> (i32, i32) {
    %c0_i32 = arith.constant 0 : i32
    %c0_i32_0 = arith.constant 0 : i32
    %c0_i32_1 = arith.constant 0 : i32
    return %c0_i32, %c0_i32_0 : i32, i32
  }
}

module attributes {stable_mosaic.version = 11 : i64} {
  func.func @fused_ae_kernel(%arg0: i32, %arg1: memref<8x128xf32, #tpu.memory_space<vmem>>, %arg2: memref<128x128xbf16, #tpu.memory_space<vmem>>, %arg3: memref<1x128xf32, #tpu.memory_space<vmem>>, %arg4: memref<1x128xf32, #tpu.memory_space<vmem>>, %arg5: memref<1x128xf32, #tpu.memory_space<vmem>>, %arg6: memref<128x128xbf16, #tpu.memory_space<vmem>>, %arg7: memref<128x128xbf16, #tpu.memory_space<vmem>>, %arg8: memref<1x128xf32, #tpu.memory_space<vmem>>, %arg9: memref<1x128xf32, #tpu.memory_space<vmem>>, %arg10: memref<1x128xf32, #tpu.memory_space<vmem>>, %arg11: memref<128x128xbf16, #tpu.memory_space<vmem>>, %arg12: memref<8x128xbf16, #tpu.memory_space<vmem>>, %arg13: memref<8x128xbf16, #tpu.memory_space<vmem>>) attributes {dimension_semantics = [#tpu.dimension_semantics<parallel>], iteration_bounds = array<i64: 1>, scalar_prefetch = 0 : i64, scratch_operands = 0 : i64, tpu.core_type = #tpu.core_type<tc>, window_params = [{transform_indices = @transform_0, window_bounds = array<i64: 8, 128>}, {pipeline_mode = #tpu.pipeline_mode<synchronous>, transform_indices = @transform_1, window_bounds = array<i64: 128, 128>}, {pipeline_mode = #tpu.pipeline_mode<synchronous>, transform_indices = @transform_2, window_bounds = array<i64: 1, 128>}, {pipeline_mode = #tpu.pipeline_mode<synchronous>, transform_indices = @transform_3, window_bounds = array<i64: 1, 128>}, {pipeline_mode = #tpu.pipeline_mode<synchronous>, transform_indices = @transform_4, window_bounds = array<i64: 1, 128>}, {pipeline_mode = #tpu.pipeline_mode<synchronous>, transform_indices = @transform_5, window_bounds = array<i64: 128, 128>}, {pipeline_mode = #tpu.pipeline_mode<synchronous>, transform_indices = @transform_6, window_bounds = array<i64: 128, 128>}, {pipeline_mode = #tpu.pipeline_mode<synchronous>, transform_indices = @transform_7, window_bounds = array<i64: 1, 128>}, {pipeline_mode = #tpu.pipeline_mode<synchronous>, transform_indices = @transform_8, window_bounds = array<i64: 1, 128>}, {pipeline_mode = #tpu.pipeline_mode<synchronous>, transform_indices = @transform_9, window_bounds = array<i64: 1, 128>}, {pipeline_mode = #tpu.pipeline_mode<synchronous>, transform_indices = @transform_10, window_bounds = array<i64: 128, 128>}, {transform_indices = @transform_11, window_bounds = array<i64: 8, 128>}, {transform_indices = @transform_12, window_bounds = array<i64: 8, 128>}]} {
    %c0 = arith.constant 0 : index
    %c0_0 = arith.constant 0 : index
    %0 = vector.load %arg1[%c0, %c0_0] : memref<8x128xf32, #tpu.memory_space<vmem>>, vector<8x128xf32>
    %1 = arith.truncf %0 : vector<8x128xf32> to vector<8x128xbf16>
    %c0_1 = arith.constant 0 : index
    %c0_2 = arith.constant 0 : index
    %2 = vector.load %arg2[%c0_1, %c0_2] : memref<128x128xbf16, #tpu.memory_space<vmem>>, vector<128x128xbf16>
    %cst = arith.constant dense<0.000000e+00> : vector<8x128xf32>
    %3 = tpu.matmul %1, %2, %cst {dimension_numbers = #tpu.dot_dimension_numbers<[1], [0], [0], [1], [0, 0, 1, 1], [], []>} : vector<8x128xbf16>, vector<128x128xbf16>, vector<8x128xf32> -> vector<8x128xf32>
    %c0_3 = arith.constant 0 : index
    %c0_4 = arith.constant 0 : index
    %4 = vector.load %arg3[%c0_3, %c0_4] : memref<1x128xf32, #tpu.memory_space<vmem>>, vector<1x128xf32>
    %5 = vector.broadcast %4 : vector<1x128xf32> to vector<8x128xf32>
    %6 = arith.addf %3, %5 : vector<8x128xf32>
    %cst_5 = arith.constant 5.000000e-01 : f32
    %7 = vector.broadcast %cst_5 : f32 to vector<8x128xf32>
    %8 = arith.mulf %7, %6 : vector<8x128xf32>
    %cst_6 = arith.constant 0.707106769 : f32
    %9 = vector.broadcast %cst_6 : f32 to vector<8x128xf32>
    %10 = arith.mulf %6, %9 : vector<8x128xf32>
    %11 = math.erf %10 : vector<8x128xf32>
    %cst_7 = arith.constant 1.000000e+00 : f32
    %12 = vector.broadcast %cst_7 : f32 to vector<8x128xf32>
    %13 = arith.addf %12, %11 : vector<8x128xf32>
    %14 = arith.mulf %8, %13 : vector<8x128xf32>
    %cst_8 = arith.constant dense<0.000000e+00> : vector<8xf32>
    %15 = vector.multi_reduction <add>, %14, %cst_8 [1] : vector<8x128xf32> to vector<8xf32>
    %16 = vector.shape_cast %15 : vector<8xf32> to vector<8x1xf32>
    %cst_9 = arith.constant 6.250000e-02 : f32
    %17 = vector.broadcast %cst_9 : f32 to vector<8x1xf32>
    %18 = arith.mulf %16, %17 : vector<8x1xf32>
    %19 = vector.broadcast %18 : vector<8x1xf32> to vector<8x128xf32>
    %20 = arith.subf %14, %19 : vector<8x128xf32>
    %21 = arith.mulf %20, %20 : vector<8x128xf32>
    %cst_10 = arith.constant dense<0.000000e+00> : vector<8xf32>
    %22 = vector.multi_reduction <add>, %21, %cst_10 [1] : vector<8x128xf32> to vector<8xf32>
    %23 = vector.shape_cast %22 : vector<8xf32> to vector<8x1xf32>
    %24 = arith.mulf %18, %18 : vector<8x1xf32>
    %cst_11 = arith.constant 1.120000e+02 : f32
    %25 = vector.broadcast %cst_11 : f32 to vector<8x1xf32>
    %26 = arith.mulf %25, %24 : vector<8x1xf32>
    %27 = arith.subf %23, %26 : vector<8x1xf32>
    %cst_12 = arith.constant 6.250000e-02 : f32
    %28 = vector.broadcast %cst_12 : f32 to vector<8x1xf32>
    %29 = arith.mulf %27, %28 : vector<8x1xf32>
    %cst_13 = arith.constant 9.99999974E-6 : f32
    %30 = vector.broadcast %cst_13 : f32 to vector<8x1xf32>
    %31 = arith.addf %29, %30 : vector<8x1xf32>
    %32 = math.rsqrt %31 : vector<8x1xf32>
    %33 = vector.broadcast %32 : vector<8x1xf32> to vector<8x128xf32>
    %34 = arith.mulf %20, %33 : vector<8x128xf32>
    %c0_14 = arith.constant 0 : index
    %c0_15 = arith.constant 0 : index
    %35 = vector.load %arg4[%c0_14, %c0_15] : memref<1x128xf32, #tpu.memory_space<vmem>>, vector<1x128xf32>
    %36 = vector.broadcast %35 : vector<1x128xf32> to vector<8x128xf32>
    %37 = arith.mulf %34, %36 : vector<8x128xf32>
    %c0_16 = arith.constant 0 : index
    %c0_17 = arith.constant 0 : index
    %38 = vector.load %arg5[%c0_16, %c0_17] : memref<1x128xf32, #tpu.memory_space<vmem>>, vector<1x128xf32>
    %39 = vector.broadcast %38 : vector<1x128xf32> to vector<8x128xf32>
    %40 = arith.addf %37, %39 : vector<8x128xf32>
    %41 = arith.truncf %40 : vector<8x128xf32> to vector<8x128xbf16>
    %c0_18 = arith.constant 0 : index
    %c0_19 = arith.constant 0 : index
    %42 = vector.load %arg6[%c0_18, %c0_19] : memref<128x128xbf16, #tpu.memory_space<vmem>>, vector<128x128xbf16>
    %cst_20 = arith.constant dense<0.000000e+00> : vector<8x128xf32>
    %43 = tpu.matmul %41, %42, %cst_20 {dimension_numbers = #tpu.dot_dimension_numbers<[1], [0], [0], [1], [0, 0, 1, 1], [], []>} : vector<8x128xbf16>, vector<128x128xbf16>, vector<8x128xf32> -> vector<8x128xf32>
    %44 = arith.truncf %43 : vector<8x128xf32> to vector<8x128xbf16>
    %c0_21 = arith.constant 0 : index
    %c0_22 = arith.constant 0 : index
    %45 = vector.load %arg12[%c0_21, %c0_22] : memref<8x128xbf16, #tpu.memory_space<vmem>>, vector<8x128xbf16>
    tpu.vector_store %arg12[%c0_21, %c0_22], %44 {strides = array<i32>} : memref<8x128xbf16, #tpu.memory_space<vmem>>, vector<8x128xbf16>,
    %46 = arith.truncf %43 : vector<8x128xf32> to vector<8x128xbf16>
    %c0_23 = arith.constant 0 : index
    %c0_24 = arith.constant 0 : index
    %47 = vector.load %arg7[%c0_23, %c0_24] : memref<128x128xbf16, #tpu.memory_space<vmem>>, vector<128x128xbf16>
    %cst_25 = arith.constant dense<0.000000e+00> : vector<8x128xf32>
    %48 = tpu.matmul %46, %47, %cst_25 {dimension_numbers = #tpu.dot_dimension_numbers<[1], [0], [0], [1], [0, 0, 1, 1], [], []>} : vector<8x128xbf16>, vector<128x128xbf16>, vector<8x128xf32> -> vector<8x128xf32>
    %c0_26 = arith.constant 0 : index
    %c0_27 = arith.constant 0 : index
    %49 = vector.load %arg8[%c0_26, %c0_27] : memref<1x128xf32, #tpu.memory_space<vmem>>, vector<1x128xf32>
    %50 = vector.broadcast %49 : vector<1x128xf32> to vector<8x128xf32>
    %51 = arith.addf %48, %50 : vector<8x128xf32>
    %cst_28 = arith.constant 5.000000e-01 : f32
    %52 = vector.broadcast %cst_28 : f32 to vector<8x128xf32>
    %53 = arith.mulf %52, %51 : vector<8x128xf32>
    %cst_29 = arith.constant 0.707106769 : f32
    %54 = vector.broadcast %cst_29 : f32 to vector<8x128xf32>
    %55 = arith.mulf %51, %54 : vector<8x128xf32>
    %56 = math.erf %55 : vector<8x128xf32>
    %cst_30 = arith.constant 1.000000e+00 : f32
    %57 = vector.broadcast %cst_30 : f32 to vector<8x128xf32>
    %58 = arith.addf %57, %56 : vector<8x128xf32>
    %59 = arith.mulf %53, %58 : vector<8x128xf32>
    %cst_31 = arith.constant dense<0.000000e+00> : vector<8xf32>
    %60 = vector.multi_reduction <add>, %59, %cst_31 [1] : vector<8x128xf32> to vector<8xf32>
    %61 = vector.shape_cast %60 : vector<8xf32> to vector<8x1xf32>
    %cst_32 = arith.constant 6.250000e-02 : f32
    %62 = vector.broadcast %cst_32 : f32 to vector<8x1xf32>
    %63 = arith.mulf %61, %62 : vector<8x1xf32>
    %64 = vector.broadcast %63 : vector<8x1xf32> to vector<8x128xf32>
    %65 = arith.subf %59, %64 : vector<8x128xf32>
    %66 = arith.mulf %65, %65 : vector<8x128xf32>
    %cst_33 = arith.constant dense<0.000000e+00> : vector<8xf32>
    %67 = vector.multi_reduction <add>, %66, %cst_33 [1] : vector<8x128xf32> to vector<8xf32>
    %68 = vector.shape_cast %67 : vector<8xf32> to vector<8x1xf32>
    %69 = arith.mulf %63, %63 : vector<8x1xf32>
    %cst_34 = arith.constant 1.120000e+02 : f32
    %70 = vector.broadcast %cst_34 : f32 to vector<8x1xf32>
    %71 = arith.mulf %70, %69 : vector<8x1xf32>
    %72 = arith.subf %68, %71 : vector<8x1xf32>
    %cst_35 = arith.constant 6.250000e-02 : f32
    %73 = vector.broadcast %cst_35 : f32 to vector<8x1xf32>
    %74 = arith.mulf %72, %73 : vector<8x1xf32>
    %cst_36 = arith.constant 9.99999974E-6 : f32
    %75 = vector.broadcast %cst_36 : f32 to vector<8x1xf32>
    %76 = arith.addf %74, %75 : vector<8x1xf32>
    %77 = math.rsqrt %76 : vector<8x1xf32>
    %78 = vector.broadcast %77 : vector<8x1xf32> to vector<8x128xf32>
    %79 = arith.mulf %65, %78 : vector<8x128xf32>
    %c0_37 = arith.constant 0 : index
    %c0_38 = arith.constant 0 : index
    %80 = vector.load %arg9[%c0_37, %c0_38] : memref<1x128xf32, #tpu.memory_space<vmem>>, vector<1x128xf32>
    %81 = vector.broadcast %80 : vector<1x128xf32> to vector<8x128xf32>
    %82 = arith.mulf %79, %81 : vector<8x128xf32>
    %c0_39 = arith.constant 0 : index
    %c0_40 = arith.constant 0 : index
    %83 = vector.load %arg10[%c0_39, %c0_40] : memref<1x128xf32, #tpu.memory_space<vmem>>, vector<1x128xf32>
    %84 = vector.broadcast %83 : vector<1x128xf32> to vector<8x128xf32>
    %85 = arith.addf %82, %84 : vector<8x128xf32>
    %86 = arith.truncf %85 : vector<8x128xf32> to vector<8x128xbf16>
    %c0_41 = arith.constant 0 : index
    %c0_42 = arith.constant 0 : index
    %87 = vector.load %arg11[%c0_41, %c0_42] : memref<128x128xbf16, #tpu.memory_space<vmem>>, vector<128x128xbf16>
    %cst_43 = arith.constant dense<0.000000e+00> : vector<8x128xf32>
    %88 = tpu.matmul %86, %87, %cst_43 {dimension_numbers = #tpu.dot_dimension_numbers<[1], [0], [0], [1], [0, 0, 1, 1], [], []>} : vector<8x128xbf16>, vector<128x128xbf16>, vector<8x128xf32> -> vector<8x128xf32>
    %89 = arith.truncf %88 : vector<8x128xf32> to vector<8x128xbf16>
    %c0_44 = arith.constant 0 : index
    %c0_45 = arith.constant 0 : index
    %90 = vector.load %arg13[%c0_44, %c0_45] : memref<8x128xbf16, #tpu.memory_space<vmem>>, vector<8x128xbf16>
    tpu.vector_store %arg13[%c0_44, %c0_45], %89 {strides = array<i32>} : memref<8x128xbf16, #tpu.memory_space<vmem>>, vector<8x128xbf16>,
    return
  }
  func.func @transform_0(%arg0: i32) -> (i32, i32) {
    %c0_i32 = arith.constant 0 : i32
    %c0_i32_0 = arith.constant 0 : i32
    return %arg0, %c0_i32 : i32, i32
  }
  func.func @transform_1(%arg0: i32) -> (i32, i32) {
    %c0_i32 = arith.constant 0 : i32
    %c0_i32_0 = arith.constant 0 : i32
    %c0_i32_1 = arith.constant 0 : i32
    return %c0_i32, %c0_i32_0 : i32, i32
  }
  func.func @transform_2(%arg0: i32) -> (i32, i32) {
    %c0_i32 = arith.constant 0 : i32
    %c0_i32_0 = arith.constant 0 : i32
    %c0_i32_1 = arith.constant 0 : i32
    return %c0_i32, %c0_i32_0 : i32, i32
  }
  func.func @transform_3(%arg0: i32) -> (i32, i32) {
    %c0_i32 = arith.constant 0 : i32
    %c0_i32_0 = arith.constant 0 : i32
    %c0_i32_1 = arith.constant 0 : i32
    return %c0_i32, %c0_i32_0 : i32, i32
  }
  func.func @transform_4(%arg0: i32) -> (i32, i32) {
    %c0_i32 = arith.constant 0 : i32
    %c0_i32_0 = arith.constant 0 : i32
    %c0_i32_1 = arith.constant 0 : i32
    return %c0_i32, %c0_i32_0 : i32, i32
  }
  func.func @transform_5(%arg0: i32) -> (i32, i32) {
    %c0_i32 = arith.constant 0 : i32
    %c0_i32_0 = arith.constant 0 : i32
    %c0_i32_1 = arith.constant 0 : i32
    return %c0_i32, %c0_i32_0 : i32, i32
  }
  func.func @transform_6(%arg0: i32) -> (i32, i32) {
    %c0_i32 = arith.constant 0 : i32
    %c0_i32_0 = arith.constant 0 : i32
    %c0_i32_1 = arith.constant 0 : i32
    return %c0_i32, %c0_i32_0 : i32, i32
  }
  func.func @transform_7(%arg0: i32) -> (i32, i32) {
    %c0_i32 = arith.constant 0 : i32
    %c0_i32_0 = arith.constant 0 : i32
    %c0_i32_1 = arith.constant 0 : i32
    return %c0_i32, %c0_i32_0 : i32, i32
  }
  func.func @transform_8(%arg0: i32) -> (i32, i32) {
    %c0_i32 = arith.constant 0 : i32
    %c0_i32_0 = arith.constant 0 : i32
    %c0_i32_1 = arith.constant 0 : i32
    return %c0_i32, %c0_i32_0 : i32, i32
  }
  func.func @transform_9(%arg0: i32) -> (i32, i32) {
    %c0_i32 = arith.constant 0 : i32
    %c0_i32_0 = arith.constant 0 : i32
    %c0_i32_1 = arith.constant 0 : i32
    return %c0_i32, %c0_i32_0 : i32, i32
  }
  func.func @transform_10(%arg0: i32) -> (i32, i32) {
    %c0_i32 = arith.constant 0 : i32
    %c0_i32_0 = arith.constant 0 : i32
    %c0_i32_1 = arith.constant 0 : i32
    return %c0_i32, %c0_i32_0 : i32, i32
  }
  func.func @transform_11(%arg0: i32) -> (i32, i32) {
    %c0_i32 = arith.constant 0 : i32
    %c0_i32_0 = arith.constant 0 : i32
    return %arg0, %c0_i32 : i32, i32
  }
  func.func @transform_12(%arg0: i32) -> (i32, i32) {
    %c0_i32 = arith.constant 0 : i32
    %c0_i32_0 = arith.constant 0 : i32
    return %arg0, %c0_i32 : i32, i32
  }
}

</mosaic_0001>

<bundles_post_ra>
// kernel: tpu_custom_call.1
= control target key start
LH: loop header
LB: loop body
LE: loop exit
PB: predicated region body
PF: predicated region fallthrough
CT: control target
= control target key end

     0   :  { %6 = vsyncpa [#allocation3], 0  ;;  %s287_s0 = inlined_call_operand.hbm [shape: f32[8,128], index: 0, kind: input, shape index: {}]   ;;  %s288_s1 = inlined_call_operand.hbm [shape: f32[8,128], index: 1, kind: output, shape index: {}]  }
   0x1   :  { %7 = vsyncpa [#allocation4], 0  ;;  %s270_s6 = smov 0  }
   0x2 LB: > { %s149_s7 = sadd.s32 4294967295, %s256_s6   ;;  %p150_p0 = scmp.ge.s32.totalorder %s256_s6, 1  ;;  %s256_s6 = sphi %s270_s6, %s13_s6  }
   0x3   : > { %p60_p1 = scmp.lt.s32.totalorder %s256_s6, 3  ;;  %s72_s10 = sshll.u32 %s287_s0, 4  ;;  %s73_s10 = int_to_ptr.hbm [resolvable:$true] %s72_s10 }
   0x4   : > { %p170_p3 = scmp.eq.s32.totalorder %s149_s7, 0  ;;  %s258_s11 = smov [#allocation2]  }
   0x5   : > { %p61_p2 = pnand %p150_p0, %p60_p1  ;;  %s74_s12 = sshll.u32 %s258_s11, 4  ;;  %s75_s12 = int_to_ptr.vmem [resolvable:$true] %s74_s12 }
   0x7   : > { %p166_p4 = pneg %p61_p2  ;;  %87 = sbr.rel (%p61_p2) target bundleno = 20 (0x14), region = 24 }
   0x9   : > { %p167_p5 = pnand %p170_p3, %p166_p4 }
   0xb   : > { %169 = dma.hbm_to_vmem [thread:$0]  (!%p167_p5), %s73_s10, 128, %s75_s12, [#allocation3]  }
   0xc   : > { %247 = dma.done.wait (%p170_p3), [#allocation3], 128  }
   0xd   : > { %249 = vsyncadd (%p170_p3), [#allocation3], 4294967168  ;;  %s259_s13 = smov [#allocation5]   ;;  %s109_s17 = sshll.u32 %s288_s1, 4  ;;  %v98_v0 = vld [vmem:[#allocation2] sm:$0xff]  ;;  %s110_s17 = int_to_ptr.hbm [resolvable:$true] %s109_s17 }
   0xe   : > { %s107_s14 = sshll.u32 %s259_s13, 4  ;;  %p172_p6 = scmp.eq.s32.totalorder %s149_s7, 1  ;;  %v99_v1 = vmul.f32 2.0, %v98_v0  ;;  %s108_s14 = int_to_ptr.vmem [resolvable:$true] %s107_s14 }
  0x10   : > { %100 = vst [vmem:[#allocation5] sm:$0xff] %v99_v1 }
  0x11   : > { %163 = dma.vmem_to_hbm [thread:$0]  (%p172_p6), %s108_s14, 128, %s110_s17, [#allocation4]  }
  0x12   : > { %251 = dma.done.wait (%p172_p6), [#allocation4], 128  }
  0x13   : > { %253 = vsyncadd (%p172_p6), [#allocation4], 4294967168 }
  0x14 PF: > { %s13_s6 = sadd.s32 1, %s256_s6  }
  0x15   : > { %p10_p7 = scmp.ge.s32.totalorder %s13_s6, 4  }
  0x17   :  { %12 = sbr.rel (!%p10_p7) target bundleno = 2 (0x2), region = 53 }
  0x1c   :  { %123 = vsyncpa [#allocation3], 1 }
  0x1d   :  { %125 = vsyncpa [#allocation3 + $0x1], 1 }
  0x1e   :  { %126 = vsyncpa [#allocation4], 1 }
  0x1f   :  { %128 = vsyncpa [#allocation4 + $0x1], 1 }

// kernel: _autoencoder_forward.1
= control target key start
LH: loop header
LB: loop body
LE: loop exit
PB: predicated region body
PF: predicated region fallthrough
CT: control target
= control target key end

     0   :  { %18 = vsyncpa [#allocation3], 0  ;;  %s1068_s0 = inlined_call_operand.vmem [shape: f32[8,128], index: 0, kind: input, shape index: {}]   ;;  %s1069_s1 = inlined_call_operand.hbm [shape: bf16[128,128], index: 1, kind: input, shape index: {}]   ;;  %s1070_s2 = inlined_call_operand.vmem [shape: f32[1,128], index: 2, kind: input, shape index: {}]   ;;  %s1071_s3 = inlined_call_operand.vmem [shape: f32[1,128], index: 3, kind: input, shape index: {}]   ;;  %s1072_s4 = inlined_call_operand.vmem [shape: f32[1,128], index: 4, kind: input, shape index: {}]   ;;  %s1073_s5 = inlined_call_operand.hbm [shape: bf16[128,128], index: 5, kind: input, shape index: {}]   ;;  %s1074_s6 = inlined_call_operand.hbm [shape: bf16[128,128], index: 6, kind: input, shape index: {}]   ;;  %s1075_s7 = inlined_call_operand.vmem [shape: f32[1,128], index: 7, kind: input, shape index: {}]   ;;  %s1076_s8 = inlined_call_operand.vmem [shape: f32[1,128], index: 8, kind: input, shape index: {}]   ;;  %s1077_s9 = inlined_call_operand.vmem [shape: f32[1,128], index: 9, kind: input, shape index: {}]   ;;  %s1078_s10 = inlined_call_operand.hbm [shape: bf16[128,128], index: 10, kind: input, shape index: {}]   ;;  %s1079_s11 = inlined_call_operand.hbm [shape: bf16[8,128], index: 11, kind: output, shape index: {0}]   ;;  %s1080_s12 = inlined_call_operand.hbm [shape: bf16[8,128], index: 12, kind: output, shape index: {1}]  }
   0x1   :  { %19 = vsyncpa [#allocation6], 0 }
   0x2   :  { %20 = vsyncpa [#allocation9], 0 }
   0x3   :  { %21 = vsyncpa [#allocation4], 0 }
   0x4   :  { %22 = vsyncpa [#allocation12], 0  ;;  %s48_s23 = sshll.u32 %s1073_s5, 4  ;;  %s956_s24 = smov [#allocation5]   ;;  %s49_s23 = int_to_ptr.hbm [resolvable:$true] %s48_s23 }
   0x5   :  { %s50_s25 = sshll.u32 %s956_s24, 4  ;;  %s29_s28 = sshll.u32 %s1069_s1, 4  ;;  %s51_s25 = int_to_ptr.vmem [resolvable:$true] %s50_s25  ;;  %s30_s28 = int_to_ptr.hbm [resolvable:$true] %s29_s28 }
   0x6   :  { %s957_s29 = smov 64   ;;  %s958_s30 = smov 4  }
   0x7   :  { %56 = dma.hbm_to_vmem [thread:$0]  %s49_s23, 1024, %s51_s25, [#allocation6], %s957_s29, %s957_s29, %s958_s30  }
   0x8   :  { %s959_s13 = smov [#allocation2]   ;;  %s61_s17 = sshll.u32 %s1074_s6, 4  ;;  %s62_s17 = int_to_ptr.hbm [resolvable:$true] %s61_s17 }
   0x9   :  { %s31_s14 = sshll.u32 %s959_s13, 4  ;;  %s80_s19 = sshll.u32 %s1078_s10, 4  ;;  %s32_s14 = int_to_ptr.vmem [resolvable:$true] %s31_s14  ;;  %s81_s19 = int_to_ptr.hbm [resolvable:$true] %s80_s19 }
   0xa   :  { %37 = dma.hbm_to_vmem [thread:$0]  %s30_s28, 1024, %s32_s14, [#allocation3], %s957_s29, %s957_s29, %s958_s30  }
   0xb   :  { %s960_s20 = smov [#allocation7]   ;;  %s961_s1 = smov [#allocation8]  }
   0xc   :  { %s63_s21 = sshll.u32 %s960_s20, 4  ;;  %s82_s22 = sshll.u32 %s961_s1, 4  ;;  %s64_s21 = int_to_ptr.vmem [resolvable:$true] %s63_s21  ;;  %s83_s22 = int_to_ptr.vmem [resolvable:$true] %s82_s22 }
   0xd   :  { %69 = dma.hbm_to_vmem [thread:$0]  %s62_s17, 1024, %s64_s21, [#allocation6], %s957_s29, %s957_s29, %s958_s30  }
   0xe   :  { %88 = dma.hbm_to_vmem [thread:$0]  %s81_s19, 1024, %s83_s22, [#allocation9], %s957_s29, %s957_s29, %s958_s30  }
   0xf   :  { %946 = dma.done.wait [#allocation3], 1024  }
  0x10   :  { %947 = vsyncadd [#allocation3], 4294966272 }
  0x11   :  { %948 = dma.done.wait [#allocation6], 2048  }
  0x12   :  { %949 = vsyncadd [#allocation6], 4294965248 }
  0x13   :  { %950 = dma.done.wait [#allocation9], 1024  }
  0x14   :  { %951 = vsyncadd [#allocation9], 4294966272  ;;  %v755_v0 = vld [vmem:[#allocation2 + $0x38] sm:$0xff]  ;;  %v754_v1 = vld [vmem:[#allocation2 + $0x30] sm:$0xff]  ;;  %s962_s30 = smov [#allocation10]   ;;  %s590_s16 = sshll.u32 %s1079_s11, 4  ;;  %s591_s16 = int_to_ptr.hbm [resolvable:$true] %s590_s16 }
  0x15   :  { %175 = vmatpush.bf16.msra.mxu0 %v755_v0  ;;  %v753_v2 = vld [vmem:[#allocation2 + $0x28] sm:$0xff]  ;;  %v752_v3 = vld [vmem:[#allocation2 + $0x20] sm:$0xff]  ;;  %v751_v4 = vld [vmem:[#allocation2 + $0x18] sm:$0xff]  ;;  %s588_s13 = sshll.u32 %s962_s30, 4  ;;  %s601_s19 = sshll.u32 %s1080_s12, 4  ;;  %s589_s13 = int_to_ptr.vmem [resolvable:$true] %s588_s13  ;;  %s602_s19 = int_to_ptr.hbm [resolvable:$true] %s601_s19 }
  0x16   :  { %v750_v5 = vld [vmem:[#allocation2 + $0x10] sm:$0xff]  ;;  %v749_v6 = vld [vmem:[#allocation2 + $0x8] sm:$0xff]  ;;  %v748_v7 = vld [vmem:[#allocation2] sm:$0xff] }
  0x17   :  { %v105_v8 = vld [vmem:[%s1068_s0] sm:$0xff]  ;;  %v763_v57 = vld [vmem:[#allocation5 + $0x38] sm:$0xff]  ;;  %v762_v58 = vld [vmem:[#allocation5 + $0x30] sm:$0xff] }
  0x18   :  { %v106_v9 = vpack.c.bf16 %v105_v8, %v105_v8  ;;  %v788_v10 = vld [vmem:[%s1070_s2] ss:$0 sm:$0xff]  ;;  %330 = vmatpush.bf16.msra.mxu1 %v763_v57  ;;  %v761_v59 = vld [vmem:[#allocation5 + $0x28] sm:$0xff]  ;;  %v759_v61 = vld [vmem:[#allocation5 + $0x18] sm:$0xff] }
  0x19   :  { %176 = vmatpush.bf16.msra.mxu0 %v754_v1  ;;  %v760_v60 = vld [vmem:[#allocation5 + $0x20] sm:$0xff]  ;;  %v758_v62 = vld [vmem:[#allocation5 + $0x10] sm:$0xff]  ;;  %v757_v63 = vld [vmem:[#allocation5 + $0x8] sm:$0xff] }
  0x1a   :  { %v756_v1 = vld [vmem:[#allocation5] sm:$0xff] }
  0x1c   :  { %331 = vmatpush.bf16.msra.mxu1 %v762_v58 }
  0x1d   :  { %177 = vmatpush.bf16.msra.mxu0 %v753_v2 }
  0x20   :  { %332 = vmatpush.bf16.msra.mxu1 %v761_v59 }
  0x21   :  { %178 = vmatpush.bf16.msra.mxu0 %v752_v3 }
  0x24   :  { %333 = vmatpush.bf16.msra.mxu1 %v760_v60 }
  0x25   :  { %179 = vmatpush.bf16.msra.mxu0 %v751_v4 }
  0x28   :  { %334 = vmatpush.bf16.msra.mxu1 %v759_v61 }
  0x29   :  { %180 = vmatpush.bf16.msra.mxu0 %v750_v5  ;;  %v771_v5 = vld [vmem:[#allocation7 + $0x38] sm:$0xff] }
  0x2a   :  { %413 = vmatpush.bf16.msra.mxu2 %v771_v5 }
  0x2c   :  { %335 = vmatpush.bf16.msra.mxu1 %v758_v62 }
  0x2d   :  { %181 = vmatpush.bf16.msra.mxu0 %v749_v6 }
  0x30   :  { %336 = vmatpush.bf16.msra.mxu1 %v757_v63 }
  0x31   :  { %182 = vmatpush.bf16.msra.mxu0 %v748_v7  ;;  %v770_v7 = vld [vmem:[#allocation7 + $0x30] sm:$0xff] }
  0x32   :  { %414 = vmatpush.bf16.msra.mxu2 %v770_v7 }
  0x34   :  { %183 = vmatmul.bf16.vlgmr.msra.gmra.mxu0 %v106_v9  ;;  %337 = vmatpush.bf16.msra.mxu1 %v756_v1  ;;  %v769_v9 = vld [vmem:[#allocation7 + $0x28] sm:$0xff] }
  0x36   :  { %415 = vmatpush.bf16.msra.mxu2 %v769_v9 }
  0xb1   :  { %v184_v11 = vpop.f32.mrf.mxu0 }
  0xb2   :  { %v185_v12 = vadd.f32 %v788_v10, %v184_v11  ;;  %v768_v10 = vld [vmem:[#allocation7 + $0x20] sm:$0xff] }
  0xb3   :  { %416 = vmatpush.bf16.msra.mxu2 %v768_v10 }
  0xb4   :  { %v189_v13 = vmul.f32 0.70710677, %v185_v12  ;;  %v188_v50 = vmul.f32 0.5, %v185_v12 }
  0xb6   :  { %v190_v14 = vmul.f32 %v189_v13, %v189_v13 }
  0xb8   :  { %v191_v15 = vmin.f32 %v190_v14, 16.0 }
  0xb9   :  { %v186_v16 = vpop.f32.mrf.mxu0 }
  0xba   :  { %v192_v17 = vmul.f32 2.1237322e-06, %v191_v15  ;;  %v203_v18 = vmul.f32 3.8918573e-05, %v191_v15  ;;  %v766_v16 = vld [vmem:[#allocation7 + $0x10] sm:$0xff] }
  0xbc   :  { %v193_v19 = vadd.f32 0.00028619796, %v192_v17  ;;  %v204_v20 = vadd.f32 0.001143296, %v203_v18 }
  0xbe   :  { %v194_v21 = vmul.f32 %v193_v19, %v191_v15  ;;  %v205_v22 = vmul.f32 %v204_v20, %v191_v15  ;;  %v789_v19 = vld [vmem:[%s1071_s3] ss:$0 sm:$0xff]  ;;  %v765_v20 = vld [vmem:[#allocation7 + $0x8] sm:$0xff] }
  0xc0   :  { %v206_v23 = vadd.f32 0.014752088, %v205_v22  ;;  %v195_v24 = vadd.f32 0.0036580483, %v194_v21 }
  0xc2   :  { %v207_v25 = vmul.f32 %v206_v23, %v191_v15  ;;  %v196_v27 = vmul.f32 %v195_v24, %v191_v15  ;;  %v790_v23 = vld [vmem:[%s1072_s4] ss:$0 sm:$0xff] }
  0xc4   :  { %v208_v26 = vadd.f32 0.112945676, %v207_v25  ;;  %v197_v30 = vadd.f32 0.05243302, %v196_v27  ;;  %v764_v27 = vld [vmem:[#allocation7] sm:$0xff] }
  0xc6   :  { %v209_v28 = vmul.f32 %v208_v26, %v191_v15  ;;  %v198_v33 = vmul.f32 %v197_v30, %v191_v15 }
  0xc8   :  { %v210_v29 = vadd.f32 0.4994258, %v209_v28  ;;  %v199_v34 = vadd.f32 0.18741608, %v198_v33 }
  0xca   :  { %v211_v31 = vmul.f32 %v210_v29, %v191_v15  ;;  %v200_v36 = vmul.f32 %v199_v34, %v191_v15 }
  0xcc   :  { %v212_v32 = vadd.f32 1.0, %v211_v31  ;;  %v201_v40 = vadd.f32 1.1283791, %v200_v36  ;;  %v791_v31 = vld [vmem:[%s1075_s7] ss:$0 sm:$0xff] }
  0xce   :  { %794 = vrcp.f32 %v212_v32  ;;  %v224_v39 = vand.u32 2147483648, %v212_v32  ;;  %v222_v42 = vand.u32 2147483647, %v212_v32  ;;  %vm218_vm1 = vweird.f32 %v212_v32 }
  0xcf   :  { %v202_v45 = vmul.f32 %v201_v40, %v189_v13  ;;  %v767_v13 = vld [vmem:[#allocation7 + $0x18] sm:$0xff] }
  0xd0   :  { %v225_v44 = vor.u32 1.1754944e-38, %v224_v39  ;;  %vm223_vm3 = vcmp.eq.f32.partialorder %v222_v42, 8.507059e+37  ;;  %417 = vmatpush.bf16.msra.mxu2 %v767_v13 }
  0xd4   :  { %v795_v35 = vpop.eup %794  ;;  %418 = vmatpush.bf16.msra.mxu2 %v766_v16  ;;  %v777_v16 = vld [vmem:[#allocation8 + $0x28] sm:$0xff] }
  0xd5   :  { %v214_v37 = vmul.f32 %v795_v35, %v212_v32  ;;  %vm219_vm0 = vweird.f32 %v795_v35 }
  0xd6   :  { %vm220_vm2 = vmor %vm218_vm1, %vm219_vm0 }
  0xd7   :  { %v215_v38 = vsub.f32 1.0, %v214_v37 }
  0xd8   :  { %419 = vmatpush.bf16.msra.mxu2 %v765_v20  ;;  %v773_v20 = vld [vmem:[#allocation8 + $0x8] sm:$0xff] }
  0xd9   :  { %v216_v41 = vmul.f32 %v795_v35, %v215_v38 }
  0xdb   :  { %v217_v43 = vadd.f32 %v795_v35, %v216_v41 }
  0xdc   :  { %420 = vmatpush.bf16.msra.mxu2 %v764_v27 }
  0xdd   :  { %v221_v46 = vsel %vm220_vm2, %v795_v35, %v217_v43 }
  0xde   :  { %v226_v47 = vsel %vm223_vm3, %v225_v44, %v221_v46 }
  0xdf   :  { %v227_v48 = vmul.f32 %v226_v47, %v202_v45 }
  0xe1   :  { %v650_v49 = vclamps-f32 %v227_v48, 1.0 }
  0xe3   :  { %v230_v51 = vadd.f32 1.0, %v650_v49 }
  0xe5   :  { %v231_v52 = vmul.f32 %v230_v51, %v188_v50 }
  0xe7   :  { %232 = vadd.xlane.f32.xlu0 %v231_v52 }
 0x15a   :  { %v233_v53 = vpop.xlane.xlu0 %232 }
 0x15b   :  { %v234_v54 = vmul.f32 0.0625, %v233_v53 }
 0x15d   :  { %v235_v55 = vsub.f32 %v231_v52, %v234_v54  ;;  %v239_v0 = vmul.f32 %v234_v54, %v234_v54 }
 0x15f   :  { %v236_v56 = vmul.f32 %v235_v55, %v235_v55  ;;  %v240_v2 = vmul.f32 112.0, %v239_v0 }
 0x161   :  { %237 = vadd.xlane.f32.xlu0 %v236_v56 }
 0x1d4   :  { %v238_v3 = vpop.xlane.xlu0 %237 }
 0x1d5   :  { %v241_v4 = vsub.f32 %v238_v3, %v240_v2 }
 0x1d7   :  { %v242_v6 = vmul.f32 0.0625, %v241_v4 }
 0x1d9   :  { %v243_v8 = vadd.f32 1e-05, %v242_v6 }
 0x1db   :  { %796 = vrsqrt.f32 %v243_v8  ;;  %vm250_vm5 = vweird.f32 %v243_v8 }
 0x1e1   :  { %v797_v11 = vpop.eup %796 }
 0x1e2   :  { %v245_v12 = vmul.f32 %v797_v11, %v243_v8  ;;  %vm251_vm4 = vweird.f32 %v797_v11 }
 0x1e3   :  { %vm252_vm6 = vmor %vm250_vm5, %vm251_vm4 }
 0x1e4   :  { %v246_v14 = vmul.f32 %v797_v11, %v245_v12 }
 0x1e6   :  { %v247_v15 = vmul.f32 0.5, %v246_v14  ;;  %v779_v14 = vld [vmem:[#allocation8 + $0x38] sm:$0xff] }
 0x1e7   :  { %568 = vmatpush.bf16.msra.mxu3 %v779_v14 }
 0x1e8   :  { %v248_v17 = vsub.f32 1.5, %v247_v15  ;;  %v778_v15 = vld [vmem:[#allocation8 + $0x30] sm:$0xff] }
 0x1ea   :  { %v249_v18 = vmul.f32 %v797_v11, %v248_v17  ;;  %v776_v17 = vld [vmem:[#allocation8 + $0x20] sm:$0xff] }
 0x1eb   :  { %569 = vmatpush.bf16.msra.mxu3 %v778_v15 }
 0x1ec   :  { %v253_v21 = vsel %vm252_vm6, %v797_v11, %v249_v18  ;;  %v775_v18 = vld [vmem:[#allocation8 + $0x18] sm:$0xff] }
 0x1ed   :  { %v254_v22 = vmul.f32 %v253_v21, %v235_v55 }
 0x1ef   :  { %v259_v24 = vmul.f32 %v789_v19, %v254_v22  ;;  %570 = vmatpush.bf16.msra.mxu3 %v777_v16  ;;  %v774_v19 = vld [vmem:[#allocation8 + $0x10] sm:$0xff]  ;;  %v772_v22 = vld [vmem:[#allocation8] sm:$0xff] }
 0x1f1   :  { %v264_v25 = vadd.f32 %v790_v23, %v259_v24 }
 0x1f3   :  { %v265_v26 = vpack.c.bf16 %v264_v25, %v264_v25  ;;  %571 = vmatpush.bf16.msra.mxu3 %v776_v17 }
 0x1f5   :  { %338 = vmatmul.bf16.vlgmr.msra.gmra.mxu1 %v265_v26 }
 0x1f7   :  { %572 = vmatpush.bf16.msra.mxu3 %v775_v18 }
 0x1fb   :  { %573 = vmatpush.bf16.msra.mxu3 %v774_v19 }
 0x1ff   :  { %574 = vmatpush.bf16.msra.mxu3 %v773_v20 }
 0x203   :  { %575 = vmatpush.bf16.msra.mxu3 %v772_v22 }
 0x272   :  { %v339_v28 = vpop.f32.mrf.mxu1 }
 0x273   :  { %v343_v29 = vpack.c.bf16 %v339_v28, %v339_v28 }
 0x275   :  { %344 = vst [vmem:[#allocation10] sm:$0xf] %v343_v29  ;;  %421 = vmatmul.bf16.vlgmr.msra.gmra.mxu2 %v343_v29 }
 0x276   :  { %593 = dma.vmem_to_hbm [thread:$0]  %s589_s13, 64, %s591_s16, [#allocation4]  }
 0x27a   :  { %v341_v30 = vpop.f32.mrf.mxu1 }
 0x2f8   :  { %v422_v32 = vpop.f32.mrf.mxu2 }
 0x2f9   :  { %v423_v33 = vadd.f32 %v791_v31, %v422_v32 }
 0x2fb   :  { %v427_v34 = vmul.f32 0.70710677, %v423_v33  ;;  %v426_v7 = vmul.f32 0.5, %v423_v33 }
 0x2fd   :  { %v428_v35 = vmul.f32 %v427_v34, %v427_v34 }
 0x2ff   :  { %v429_v36 = vmin.f32 %v428_v35, 16.0 }
 0x300   :  { %v424_v37 = vpop.f32.mrf.mxu2 }
 0x301   :  { %v430_v38 = vmul.f32 2.1237322e-06, %v429_v36  ;;  %v441_v39 = vmul.f32 3.8918573e-05, %v429_v36  ;;  %v793_v37 = vld [vmem:[%s1077_s9] ss:$0 sm:$0xff] }
 0x303   :  { %v431_v40 = vadd.f32 0.00028619796, %v430_v38  ;;  %v442_v41 = vadd.f32 0.001143296, %v441_v39 }
 0x305   :  { %v432_v42 = vmul.f32 %v431_v40, %v429_v36  ;;  %v443_v43 = vmul.f32 %v442_v41, %v429_v36 }
 0x307   :  { %v444_v44 = vadd.f32 0.014752088, %v443_v43  ;;  %v433_v45 = vadd.f32 0.0036580483, %v432_v42 }
 0x309   :  { %v445_v46 = vmul.f32 %v444_v44, %v429_v36  ;;  %v434_v48 = vmul.f32 %v433_v45, %v429_v36 }
 0x30b   :  { %v446_v47 = vadd.f32 0.112945676, %v445_v46  ;;  %v435_v51 = vadd.f32 0.05243302, %v434_v48 }
 0x30d   :  { %v447_v49 = vmul.f32 %v446_v47, %v429_v36  ;;  %v436_v54 = vmul.f32 %v435_v51, %v429_v36 }
 0x30f   :  { %v448_v50 = vadd.f32 0.4994258, %v447_v49  ;;  %v437_v55 = vadd.f32 0.18741608, %v436_v54 }
 0x311   :  { %v449_v52 = vmul.f32 %v448_v50, %v429_v36  ;;  %v438_v57 = vmul.f32 %v437_v55, %v429_v36 }
 0x313   :  { %v450_v53 = vadd.f32 1.0, %v449_v52  ;;  %v439_v61 = vadd.f32 1.1283791, %v438_v57 }
 0x315   :  { %798 = vrcp.f32 %v450_v53  ;;  %v462_v60 = vand.u32 2147483648, %v450_v53  ;;  %v460_v63 = vand.u32 2147483647, %v450_v53  ;;  %vm456_vm8 = vweird.f32 %v450_v53 }
 0x316   :  { %v440_v2 = vmul.f32 %v439_v61, %v427_v34  ;;  %v792_v34 = vld [vmem:[%s1076_s8] ss:$0 sm:$0xff]  ;;  %s963_s8 = smov [#allocation11]  }
 0x317   :  { %v463_v1 = vor.u32 1.1754944e-38, %v462_v60  ;;  %vm461_vm10 = vcmp.eq.f32.partialorder %v460_v63, 8.507059e+37  ;;  %s599_s17 = sshll.u32 %s963_s8, 4  ;;  %s600_s17 = int_to_ptr.vmem [resolvable:$true] %s599_s17 }
 0x31b   :  { %v799_v56 = vpop.eup %798 }
 0x31c   :  { %v452_v58 = vmul.f32 %v799_v56, %v450_v53  ;;  %vm457_vm7 = vweird.f32 %v799_v56 }
 0x31d   :  { %vm458_vm9 = vmor %vm456_vm8, %vm457_vm7 }
 0x31e   :  { %v453_v59 = vsub.f32 1.0, %v452_v58 }
 0x320   :  { %v454_v62 = vmul.f32 %v799_v56, %v453_v59 }
 0x322   :  { %v455_v0 = vadd.f32 %v799_v56, %v454_v62 }
 0x324   :  { %v459_v3 = vsel %vm458_vm9, %v799_v56, %v455_v0 }
 0x325   :  { %v464_v4 = vsel %vm461_vm10, %v463_v1, %v459_v3 }
 0x326   :  { %v465_v5 = vmul.f32 %v464_v4, %v440_v2 }
 0x328   :  { %v715_v6 = vclamps-f32 %v465_v5, 1.0 }
 0x32a   :  { %v468_v8 = vadd.f32 1.0, %v715_v6 }
 0x32c   :  { %v469_v9 = vmul.f32 %v468_v8, %v426_v7 }
 0x32e   :  { %470 = vadd.xlane.f32.xlu1 %v469_v9 }
 0x3a1   :  { %v471_v10 = vpop.xlane.xlu1 %470 }
 0x3a2   :  { %v472_v11 = vmul.f32 0.0625, %v471_v10 }
 0x3a4   :  { %v473_v12 = vsub.f32 %v469_v9, %v472_v11  ;;  %v477_v21 = vmul.f32 %v472_v11, %v472_v11 }
 0x3a6   :  { %v474_v13 = vmul.f32 %v473_v12, %v473_v12  ;;  %v478_v23 = vmul.f32 112.0, %v477_v21 }
 0x3a8   :  { %475 = vadd.xlane.f32.xlu1 %v474_v13 }
 0x41b   :  { %v476_v24 = vpop.xlane.xlu1 %475 }
 0x41c   :  { %v479_v25 = vsub.f32 %v476_v24, %v478_v23 }
 0x41e   :  { %v480_v26 = vmul.f32 0.0625, %v479_v25 }
 0x420   :  { %v481_v27 = vadd.f32 1e-05, %v480_v26 }
 0x422   :  { %800 = vrsqrt.f32 %v481_v27  ;;  %vm488_vm12 = vweird.f32 %v481_v27 }
 0x428   :  { %v801_v28 = vpop.eup %800 }
 0x429   :  { %v483_v29 = vmul.f32 %v801_v28, %v481_v27  ;;  %vm489_vm11 = vweird.f32 %v801_v28 }
 0x42a   :  { %vm490_vm13 = vmor %vm488_vm12, %vm489_vm11 }
 0x42b   :  { %v484_v30 = vmul.f32 %v801_v28, %v483_v29 }
 0x42d   :  { %v485_v31 = vmul.f32 0.5, %v484_v30 }
 0x42f   :  { %v486_v32 = vsub.f32 1.5, %v485_v31 }
 0x431   :  { %v487_v33 = vmul.f32 %v801_v28, %v486_v32 }
 0x433   :  { %v491_v35 = vsel %vm490_vm13, %v801_v28, %v487_v33 }
 0x434   :  { %v492_v36 = vmul.f32 %v491_v35, %v473_v12 }
 0x436   :  { %v497_v38 = vmul.f32 %v792_v34, %v492_v36 }
 0x438   :  { %v502_v39 = vadd.f32 %v793_v37, %v497_v38 }
 0x43a   :  { %v503_v40 = vpack.c.bf16 %v502_v39, %v502_v39 }
 0x43c   :  { %576 = vmatmul.bf16.vlgmr.msra.gmra.mxu3 %v503_v40 }
 0x4bf   :  { %v577_v41 = vpop.f32.mrf.mxu3 }
 0x4c0   :  { %v581_v42 = vpack.c.bf16 %v577_v41, %v577_v41 }
 0x4c2   :  { %582 = vst [vmem:[#allocation11] sm:$0xf] %v581_v42 }
 0x4c3   :  { %604 = dma.vmem_to_hbm [thread:$0]  %s600_s17, 64, %s602_s19, [#allocation12]  }
 0x4c7   :  { %v579_v43 = vpop.f32.mrf.mxu3 }
 0x4c8   :  { %952 = dma.done.wait [#allocation4], 64  }
 0x4c9   :  { %953 = vsyncadd [#allocation4], 4294967232 }
 0x4ca   :  { %954 = dma.done.wait [#allocation12], 64  }
 0x4cb   :  { %955 = vsyncadd [#allocation12], 4294967232 }
 0x4cc   :  { %613 = vsyncpa [#allocation3], 1 }
 0x4cd   :  { %614 = vsyncpa [#allocation6], 1 }
 0x4ce   :  { %615 = vsyncpa [#allocation9], 1 }
 0x4cf   :  { %616 = vsyncpa [#allocation4], 1 }
 0x4d0   :  { %617 = vsyncpa [#allocation12], 1 }

</bundles_post_ra>
